<compile_context>
chip_gen: v7x
topology: tpu7x:2x2x1
jax: 0.10.0
libtpu: 0.0.40
codegen_flags: <defaults>
</compile_context>

<pallas_src>
import functools

import numpy as np
import jax
import jax.numpy as jnp
from jax.experimental import pallas as pl
from jax.experimental.pallas import tpu as pltpu

_DECODER_CH = 16  # channel count of the `view(B, 16, L3)` in the module


# ---------------------------------------------------------------------------
# One-time parameter preprocessing (host-side, outside the hot path)
# ---------------------------------------------------------------------------
def _upsample_matrix(l_in, scale):
    """0/1 matrix U (l_in, scale*l_in) with (x @ U)[c, t] == x[c, t // scale]."""
    u = np.zeros((l_in, l_in * scale), np.float32)
    for i in range(l_in):
        for s in range(scale):
            u[i, i * scale + s] = 1.0
    return jnp.asarray(u)


def _stack_conv_weight(w):
    """(Cout, Cin, 3) torch-layout conv weight -> (Cout, 3*Cin) merged-tap matrix.

    Columns [0:Cin)   multiply x[t-1]
    Columns [Cin:2Cin) multiply x[t]
    Columns [2Cin:)   multiply x[t+1]
    """
    return jnp.concatenate([w[:, :, 0], w[:, :, 1], w[:, :, 2]], axis=1)


def prepare_params(params, *, conv_output_length):
    """Pre-bake weight layouts + upsample matrices. Call ONCE (batch-independent)."""
    L3 = conv_output_length
    return {
        "wfc": jnp.transpose(params["fc_w"]),           # (D, F)
        "bfc": params["fc_b"].reshape(1, -1),            # (1, F)
        "u1": _upsample_matrix(L3, 2),                   # (L3, 2*L3)
        "w1": _stack_conv_weight(params["w1"]),          # (32, 3*16)
        "b1": params["b1"].reshape(-1, 1),               # (32, 1)
        "u2": _upsample_matrix(2 * L3, 2),               # (2*L3, 4*L3)
        "w2": _stack_conv_weight(params["w2"]),          # (32, 3*32)
        "b2": params["b2"].reshape(-1, 1),               # (32, 1)
        "w3": _stack_conv_weight(params["w3"]),          # (Cout, 3*32)
        "b3": params["b3"].reshape(-1, 1),               # (Cout, 1)
    }


# ---------------------------------------------------------------------------
# Fused Pallas kernel (one batch element per grid step, all activations 2-D)
# ---------------------------------------------------------------------------
def _conv3(x, w_ref, b_ref, relu):
    """kernel_size=3, padding=1 conv on (Cin, L) activations via one merged matmul.

    Shifts/padding are lane ops (zero-column concat + static slices); the conv
    itself is a single (Cout, 3*Cin) @ (3*Cin, L) MXU contraction.
    """
    cin, L = x.shape
    zcol = jnp.zeros((cin, 1), jnp.float32)
    x_m1 = jnp.concatenate([zcol, x[:, :L - 1]], axis=1)   # value at t-1 (left pad 0)
    x_p1 = jnp.concatenate([x[:, 1:], zcol], axis=1)       # value at t+1 (right pad 0)
    x_stack = jnp.concatenate([x_m1, x, x_p1], axis=0)     # (3*Cin, L)
    y = jnp.dot(w_ref[...], x_stack, preferred_element_type=jnp.float32) + b_ref[...]
    if relu:
        y = jnp.maximum(y, 0.0)
    return y


def _decoder_kernel(z_ref, wfc_ref, bfc_ref,
                    u1_ref, w1_ref, b1_ref,
                    u2_ref, w2_ref, b2_ref,
                    w3_ref, b3_ref,
                    o_ref, *, L3):
    b = pl.program_id(0)

    # fc: (1, D) @ (D, F) + (1, F)  -> (1, F)
    zb = z_ref[pl.ds(b, 1), :]
    fc = jnp.dot(zb, wfc_ref[...], preferred_element_type=jnp.float32) + bfc_ref[...]

    # view(16, L3): read-side re-layout only (16 static lane slices + one concat).
    x = jnp.concatenate(
        [fc[:, c * L3:(c + 1) * L3] for c in range(_DECODER_CH)], axis=0)   # (16, L3)

    # upsample x2 (tiny shared 0/1 matrix) + conv_up1 + ReLU
    x = jnp.dot(x, u1_ref[...], preferred_element_type=jnp.float32)         # (16, 2*L3)
    x = _conv3(x, w1_ref, b1_ref, relu=True)                                # (32, 2*L3)

    # upsample x2 + conv_up2 + ReLU
    x = jnp.dot(x, u2_ref[...], preferred_element_type=jnp.float32)         # (32, 4*L3)
    x = _conv3(x, w2_ref, b2_ref, relu=True)                                # (32, 4*L3)

    # conv_final (no activation, no upsample)
    x = _conv3(x, w3_ref, b3_ref, relu=False)                               # (Cout, 4*L3)

    # Lane-dense full-length store; cropping happens in the wrapper.
    o_ref[...] = x


# ---------------------------------------------------------------------------
# Wrapper
# ---------------------------------------------------------------------------
def reconstruction_decoder_forward(z, baked, *, conv_output_length,
                                   output_channels, original_length):
    B, _ = z.shape
    L3 = conv_output_length
    L2 = 4 * L3
    F = baked["wfc"].shape[1]
    assert F == _DECODER_CH * L3, (F, L3)
    if L2 < original_length:
        raise ValueError("Upsampled length is smaller than original length.")

    kern = functools.partial(_decoder_kernel, L3=L3)

    inputs = (z, baked["wfc"], baked["bfc"],
              baked["u1"], baked["w1"], baked["b1"],
              baked["u2"], baked["w2"], baked["b2"],
              baked["w3"], baked["b3"])

    def const_spec(shape):
        # Full-array, grid-constant block: stays resident in VMEM across steps.
        return pl.BlockSpec(shape, lambda b, _n=len(shape): (0,) * _n)

    out = pl.pallas_call(
        kern,
        out_shape=jax.ShapeDtypeStruct((B, output_channels, L2), jnp.float32),
        grid=(B,),
        in_specs=[const_spec(a.shape) for a in inputs],
        out_specs=pl.BlockSpec((None, output_channels, L2), lambda b: (b, 0, 0)),
        compiler_params=pltpu.CompilerParams(
            dimension_semantics=("parallel",),
            vmem_limit_bytes=32 * 1024 * 1024),
    )(*inputs)

    crop = L2 - original_length
    if crop > 0:
        out = out[:, :, :original_length]   # free XLA slice (keeps kernel stores lane-dense)
    return out


# ---------------------------------------------------------------------------
# Pure-JAX reference (for correctness check)
# ---------------------------------------------------------------------------
def _ref_conv1d(x, w, b):
    dn = jax.lax.conv_dimension_numbers(x.shape, w.shape, ("NCH", "OIH", "NCH"))
    y = jax.lax.conv_general_dilated(x, w, (1,), ((1, 1),), dimension_numbers=dn)
    return y + b[None, :, None]


def reference_forward(z, params, *, conv_output_length, original_length):
    B = z.shape[0]
    x = z @ params["fc_w"].T + params["fc_b"]
    x = x.reshape(B, _DECODER_CH, conv_output_length)
    x = jnp.repeat(x, 2, axis=-1)
    x = jax.nn.relu(_ref_conv1d(x, params["w1"], params["b1"]))
    x = jnp.repeat(x, 2, axis=-1)
    x = jax.nn.relu(_ref_conv1d(x, params["w2"], params["b2"]))
    x = _ref_conv1d(x, params["w3"], params["b3"])
    crop = conv_output_length * 4 - original_length
    if crop > 0:
        x = x[:, :, :-crop]
    return x


# ---------------------------------------------------------------------------
# Main
# ---------------------------------------------------------------------------
if __name__ == "__main__":
    batch = 2
    latent_dim = 16
    conv_output_length = 8                               # L3
    flattened_size = _DECODER_CH * conv_output_length    # 128
    output_channels = 8
    original_length = 30                                 # 4*L3 = 32 -> crop 2

    key = jax.random.PRNGKey(0)
    keys = jax.random.split(key, 9)
    params = {
        "fc_w": 0.1 * jax.random.normal(keys[0], (flattened_size, latent_dim), jnp.float32),
        "fc_b": 0.1 * jax.random.normal(keys[1], (flattened_size,), jnp.float32),
        "w1": 0.1 * jax.random.normal(keys[2], (32, 16, 3), jnp.float32),
        "b1": 0.1 * jax.random.normal(keys[3], (32,), jnp.float32),
        "w2": 0.1 * jax.random.normal(keys[4], (32, 32, 3), jnp.float32),
        "b2": 0.1 * jax.random.normal(keys[5], (32,), jnp.float32),
        "w3": 0.1 * jax.random.normal(keys[6], (output_channels, 32, 3), jnp.float32),
        "b3": 0.1 * jax.random.normal(keys[7], (output_channels,), jnp.float32),
    }
    z = jax.random.normal(keys[8], (batch, latent_dim), jnp.float32)

    # One-time (and batch-independent) parameter baking, outside the hot path.
    baked = prepare_params(params, conv_output_length=conv_output_length)

    fwd = jax.jit(functools.partial(
        reconstruction_decoder_forward,
        conv_output_length=conv_output_length,
        output_channels=output_channels,
        original_length=original_length))
    out = jax.block_until_ready(fwd(z, baked))

    ref = jax.block_until_ready(reference_forward(
        z, params,
        conv_output_length=conv_output_length,
        original_length=original_length))

    assert out.shape == (batch, output_channels, original_length), out.shape
    max_err = float(jnp.max(jnp.abs(out - ref)))
    assert jnp.allclose(out, ref, atol=1e-3, rtol=1e-3), max_err
    print("KERNEL_OK")
</pallas_src>

<mosaic_0001>
module attributes {stable_mosaic.version = 11 : i64} {
  func.func @_decoder_kernel(%arg0: i32, %arg1: memref<2x16xf32, #tpu.memory_space<vmem>>, %arg2: memref<16x128xf32, #tpu.memory_space<vmem>>, %arg3: memref<1x128xf32, #tpu.memory_space<vmem>>, %arg4: memref<8x16xf32, #tpu.memory_space<vmem>>, %arg5: memref<32x48xf32, #tpu.memory_space<vmem>>, %arg6: memref<32x1xf32, #tpu.memory_space<vmem>>, %arg7: memref<16x32xf32, #tpu.memory_space<vmem>>, %arg8: memref<32x96xf32, #tpu.memory_space<vmem>>, %arg9: memref<32x1xf32, #tpu.memory_space<vmem>>, %arg10: memref<8x96xf32, #tpu.memory_space<vmem>>, %arg11: memref<8x1xf32, #tpu.memory_space<vmem>>, %arg12: memref<1x8x32xf32, #tpu.memory_space<vmem>>) attributes {dimension_semantics = [#tpu.dimension_semantics<parallel>], iteration_bounds = array<i64: 2>, scalar_prefetch = 0 : i64, scratch_operands = 0 : i64, tpu.core_type = #tpu.core_type<tc>, window_params = [{pipeline_mode = #tpu.pipeline_mode<synchronous>, transform_indices = @transform_0, window_bounds = array<i64: 2, 16>}, {pipeline_mode = #tpu.pipeline_mode<synchronous>, transform_indices = @transform_1, window_bounds = array<i64: 16, 128>}, {pipeline_mode = #tpu.pipeline_mode<synchronous>, transform_indices = @transform_2, window_bounds = array<i64: 1, 128>}, {pipeline_mode = #tpu.pipeline_mode<synchronous>, transform_indices = @transform_3, window_bounds = array<i64: 8, 16>}, {pipeline_mode = #tpu.pipeline_mode<synchronous>, transform_indices = @transform_4, window_bounds = array<i64: 32, 48>}, {pipeline_mode = #tpu.pipeline_mode<synchronous>, transform_indices = @transform_5, window_bounds = array<i64: 32, 1>}, {pipeline_mode = #tpu.pipeline_mode<synchronous>, transform_indices = @transform_6, window_bounds = array<i64: 16, 32>}, {pipeline_mode = #tpu.pipeline_mode<synchronous>, transform_indices = @transform_7, window_bounds = array<i64: 32, 96>}, {pipeline_mode = #tpu.pipeline_mode<synchronous>, transform_indices = @transform_8, window_bounds = array<i64: 32, 1>}, {pipeline_mode = #tpu.pipeline_mode<synchronous>, transform_indices = @transform_9, window_bounds = array<i64: 8, 96>}, {pipeline_mode = #tpu.pipeline_mode<synchronous>, transform_indices = @transform_10, window_bounds = array<i64: 8, 1>}, {transform_indices = @transform_11, window_bounds = array<i64: 1, 8, 32>}]} {
    %0 = arith.index_cast %arg0 : i32 to index
    %c0 = arith.constant 0 : index
    %1 = vector.load %arg1[%0, %c0] : memref<2x16xf32, #tpu.memory_space<vmem>>, vector<1x16xf32>
    %c0_0 = arith.constant 0 : index
    %c0_1 = arith.constant 0 : index
    %2 = vector.load %arg2[%c0_0, %c0_1] : memref<16x128xf32, #tpu.memory_space<vmem>>, vector<16x128xf32>
    %cst = arith.constant dense<0.000000e+00> : vector<1x128xf32>
    %3 = tpu.matmul %1, %2, %cst {dimension_numbers = #tpu.dot_dimension_numbers<[1], [0], [0], [1], [0, 0, 1, 1], [], []>} : vector<1x16xf32>, vector<16x128xf32>, vector<1x128xf32> -> vector<1x128xf32>
    %c0_2 = arith.constant 0 : index
    %c0_3 = arith.constant 0 : index
    %4 = vector.load %arg3[%c0_2, %c0_3] : memref<1x128xf32, #tpu.memory_space<vmem>>, vector<1x128xf32>
    %5 = arith.addf %3, %4 : vector<1x128xf32>
    %6 = vector.extract_strided_slice %5 {offsets = [0, 0], sizes = [1, 8], strides = [1, 1]} : vector<1x128xf32> to vector<1x8xf32>
    %7 = vector.extract_strided_slice %5 {offsets = [0, 8], sizes = [1, 8], strides = [1, 1]} : vector<1x128xf32> to vector<1x8xf32>
    %8 = vector.extract_strided_slice %5 {offsets = [0, 16], sizes = [1, 8], strides = [1, 1]} : vector<1x128xf32> to vector<1x8xf32>
    %9 = vector.extract_strided_slice %5 {offsets = [0, 24], sizes = [1, 8], strides = [1, 1]} : vector<1x128xf32> to vector<1x8xf32>
    %10 = vector.extract_strided_slice %5 {offsets = [0, 32], sizes = [1, 8], strides = [1, 1]} : vector<1x128xf32> to vector<1x8xf32>
    %11 = vector.extract_strided_slice %5 {offsets = [0, 40], sizes = [1, 8], strides = [1, 1]} : vector<1x128xf32> to vector<1x8xf32>
    %12 = vector.extract_strided_slice %5 {offsets = [0, 48], sizes = [1, 8], strides = [1, 1]} : vector<1x128xf32> to vector<1x8xf32>
    %13 = vector.extract_strided_slice %5 {offsets = [0, 56], sizes = [1, 8], strides = [1, 1]} : vector<1x128xf32> to vector<1x8xf32>
    %14 = vector.extract_strided_slice %5 {offsets = [0, 64], sizes = [1, 8], strides = [1, 1]} : vector<1x128xf32> to vector<1x8xf32>
    %15 = vector.extract_strided_slice %5 {offsets = [0, 72], sizes = [1, 8], strides = [1, 1]} : vector<1x128xf32> to vector<1x8xf32>
    %16 = vector.extract_strided_slice %5 {offsets = [0, 80], sizes = [1, 8], strides = [1, 1]} : vector<1x128xf32> to vector<1x8xf32>
    %17 = vector.extract_strided_slice %5 {offsets = [0, 88], sizes = [1, 8], strides = [1, 1]} : vector<1x128xf32> to vector<1x8xf32>
    %18 = vector.extract_strided_slice %5 {offsets = [0, 96], sizes = [1, 8], strides = [1, 1]} : vector<1x128xf32> to vector<1x8xf32>
    %19 = vector.extract_strided_slice %5 {offsets = [0, 104], sizes = [1, 8], strides = [1, 1]} : vector<1x128xf32> to vector<1x8xf32>
    %20 = vector.extract_strided_slice %5 {offsets = [0, 112], sizes = [1, 8], strides = [1, 1]} : vector<1x128xf32> to vector<1x8xf32>
    %21 = vector.extract_strided_slice %5 {offsets = [0, 120], sizes = [1, 8], strides = [1, 1]} : vector<1x128xf32> to vector<1x8xf32>
    %22 = tpu.concatenate %6, %7, %8, %9, %10, %11, %12, %13, %14, %15, %16, %17, %18, %19, %20, %21 in 0 : vector<1x8xf32>, vector<1x8xf32>, vector<1x8xf32>, vector<1x8xf32>, vector<1x8xf32>, vector<1x8xf32>, vector<1x8xf32>, vector<1x8xf32>, vector<1x8xf32>, vector<1x8xf32>, vector<1x8xf32>, vector<1x8xf32>, vector<1x8xf32>, vector<1x8xf32>, vector<1x8xf32>, vector<1x8xf32> -> vector<16x8xf32>
    %c0_4 = arith.constant 0 : index
    %c0_5 = arith.constant 0 : index
    %23 = vector.load %arg4[%c0_4, %c0_5] : memref<8x16xf32, #tpu.memory_space<vmem>>, vector<8x16xf32>
    %cst_6 = arith.constant dense<0.000000e+00> : vector<16x16xf32>
    %24 = tpu.matmul %22, %23, %cst_6 {dimension_numbers = #tpu.dot_dimension_numbers<[1], [0], [0], [1], [0, 0, 1, 1], [], []>} : vector<16x8xf32>, vector<8x16xf32>, vector<16x16xf32> -> vector<16x16xf32>
    %cst_7 = arith.constant 0.000000e+00 : f32
    %25 = vector.broadcast %cst_7 : f32 to vector<16x1xf32>
    %26 = vector.extract_strided_slice %24 {offsets = [0, 0], sizes = [16, 15], strides = [1, 1]} : vector<16x16xf32> to vector<16x15xf32>
    %27 = tpu.concatenate %25, %26 in 1 : vector<16x1xf32>, vector<16x15xf32> -> vector<16x16xf32>
    %28 = vector.extract_strided_slice %24 {offsets = [0, 1], sizes = [16, 15], strides = [1, 1]} : vector<16x16xf32> to vector<16x15xf32>
    %29 = tpu.concatenate %28, %25 in 1 : vector<16x15xf32>, vector<16x1xf32> -> vector<16x16xf32>
    %30 = tpu.concatenate %27, %24, %29 in 0 : vector<16x16xf32>, vector<16x16xf32>, vector<16x16xf32> -> vector<48x16xf32>
    %c0_8 = arith.constant 0 : index
    %c0_9 = arith.constant 0 : index
    %31 = vector.load %arg5[%c0_8, %c0_9] : memref<32x48xf32, #tpu.memory_space<vmem>>, vector<32x48xf32>
    %cst_10 = arith.constant dense<0.000000e+00> : vector<32x16xf32>
    %32 = tpu.matmul %31, %30, %cst_10 {dimension_numbers = #tpu.dot_dimension_numbers<[1], [0], [0], [1], [0, 0, 1, 1], [], []>} : vector<32x48xf32>, vector<48x16xf32>, vector<32x16xf32> -> vector<32x16xf32>
    %c0_11 = arith.constant 0 : index
    %c0_12 = arith.constant 0 : index
    %33 = vector.load %arg6[%c0_11, %c0_12] : memref<32x1xf32, #tpu.memory_space<vmem>>, vector<32x1xf32>
    %34 = vector.broadcast %33 : vector<32x1xf32> to vector<32x16xf32>
    %35 = arith.addf %32, %34 : vector<32x16xf32>
    %cst_13 = arith.constant 0.000000e+00 : f32
    %36 = vector.broadcast %cst_13 : f32 to vector<32x16xf32>
    %37 = arith.maximumf %35, %36 : vector<32x16xf32>
    %c0_14 = arith.constant 0 : index
    %c0_15 = arith.constant 0 : index
    %38 = vector.load %arg7[%c0_14, %c0_15] : memref<16x32xf32, #tpu.memory_space<vmem>>, vector<16x32xf32>
    %cst_16 = arith.constant dense<0.000000e+00> : vector<32x32xf32>
    %39 = tpu.matmul %37, %38, %cst_16 {dimension_numbers = #tpu.dot_dimension_numbers<[1], [0], [0], [1], [0, 0, 1, 1], [], []>} : vector<32x16xf32>, vector<16x32xf32>, vector<32x32xf32> -> vector<32x32xf32>
    %cst_17 = arith.constant 0.000000e+00 : f32
    %40 = vector.broadcast %cst_17 : f32 to vector<32x1xf32>
    %41 = vector.extract_strided_slice %39 {offsets = [0, 0], sizes = [32, 31], strides = [1, 1]} : vector<32x32xf32> to vector<32x31xf32>
    %42 = tpu.concatenate %40, %41 in 1 : vector<32x1xf32>, vector<32x31xf32> -> vector<32x32xf32>
    %43 = vector.extract_strided_slice %39 {offsets = [0, 1], sizes = [32, 31], strides = [1, 1]} : vector<32x32xf32> to vector<32x31xf32>
    %44 = tpu.concatenate %43, %40 in 1 : vector<32x31xf32>, vector<32x1xf32> -> vector<32x32xf32>
    %45 = tpu.concatenate %42, %39, %44 in 0 : vector<32x32xf32>, vector<32x32xf32>, vector<32x32xf32> -> vector<96x32xf32>
    %c0_18 = arith.constant 0 : index
    %c0_19 = arith.constant 0 : index
    %46 = vector.load %arg8[%c0_18, %c0_19] : memref<32x96xf32, #tpu.memory_space<vmem>>, vector<32x96xf32>
    %cst_20 = arith.constant dense<0.000000e+00> : vector<32x32xf32>
    %47 = tpu.matmul %46, %45, %cst_20 {dimension_numbers = #tpu.dot_dimension_numbers<[1], [0], [0], [1], [0, 0, 1, 1], [], []>} : vector<32x96xf32>, vector<96x32xf32>, vector<32x32xf32> -> vector<32x32xf32>
    %c0_21 = arith.constant 0 : index
    %c0_22 = arith.constant 0 : index
    %48 = vector.load %arg9[%c0_21, %c0_22] : memref<32x1xf32, #tpu.memory_space<vmem>>, vector<32x1xf32>
    %49 = vector.broadcast %48 : vector<32x1xf32> to vector<32x32xf32>
    %50 = arith.addf %47, %49 : vector<32x32xf32>
    %cst_23 = arith.constant 0.000000e+00 : f32
    %51 = vector.broadcast %cst_23 : f32 to vector<32x32xf32>
    %52 = arith.maximumf %50, %51 : vector<32x32xf32>
    %cst_24 = arith.constant 0.000000e+00 : f32
    %53 = vector.broadcast %cst_24 : f32 to vector<32x1xf32>
    %54 = vector.extract_strided_slice %52 {offsets = [0, 0], sizes = [32, 31], strides = [1, 1]} : vector<32x32xf32> to vector<32x31xf32>
    %55 = tpu.concatenate %53, %54 in 1 : vector<32x1xf32>, vector<32x31xf32> -> vector<32x32xf32>
    %56 = vector.extract_strided_slice %52 {offsets = [0, 1], sizes = [32, 31], strides = [1, 1]} : vector<32x32xf32> to vector<32x31xf32>
    %57 = tpu.concatenate %56, %53 in 1 : vector<32x31xf32>, vector<32x1xf32> -> vector<32x32xf32>
    %58 = tpu.concatenate %55, %52, %57 in 0 : vector<32x32xf32>, vector<32x32xf32>, vector<32x32xf32> -> vector<96x32xf32>
    %c0_25 = arith.constant 0 : index
    %c0_26 = arith.constant 0 : index
    %59 = vector.load %arg10[%c0_25, %c0_26] : memref<8x96xf32, #tpu.memory_space<vmem>>, vector<8x96xf32>
    %cst_27 = arith.constant dense<0.000000e+00> : vector<8x32xf32>
    %60 = tpu.matmul %59, %58, %cst_27 {dimension_numbers = #tpu.dot_dimension_numbers<[1], [0], [0], [1], [0, 0, 1, 1], [], []>} : vector<8x96xf32>, vector<96x32xf32>, vector<8x32xf32> -> vector<8x32xf32>
    %c0_28 = arith.constant 0 : index
    %c0_29 = arith.constant 0 : index
    %61 = vector.load %arg11[%c0_28, %c0_29] : memref<8x1xf32, #tpu.memory_space<vmem>>, vector<8x1xf32>
    %62 = vector.broadcast %61 : vector<8x1xf32> to vector<8x32xf32>
    %63 = arith.addf %60, %62 : vector<8x32xf32>
    %c0_30 = arith.constant 0 : index
    %c0_31 = arith.constant 0 : index
    %c0_32 = arith.constant 0 : index
    %64 = vector.load %arg12[%c0_30, %c0_31, %c0_32] : memref<1x8x32xf32, #tpu.memory_space<vmem>>, vector<1x8x32xf32>
    %65 = vector.shape_cast %64 : vector<1x8x32xf32> to vector<8x32xf32>
    %66 = vector.shape_cast %63 : vector<8x32xf32> to vector<1x8x32xf32>
    tpu.vector_store %arg12[%c0_30, %c0_31, %c0_32], %66 {strides = array<i32>} : memref<1x8x32xf32, #tpu.memory_space<vmem>>, vector<1x8x32xf32>,
    return
  }
  func.func @transform_0(%arg0: i32) -> (i32, i32) {
    %c0_i32 = arith.constant 0 : i32
    %c0_i32_0 = arith.constant 0 : i32
    %c0_i32_1 = arith.constant 0 : i32
    return %c0_i32, %c0_i32_0 : i32, i32
  }
  func.func @transform_1(%arg0: i32) -> (i32, i32) {
    %c0_i32 = arith.constant 0 : i32
    %c0_i32_0 = arith.constant 0 : i32
    %c0_i32_1 = arith.constant 0 : i32
    return %c0_i32, %c0_i32_0 : i32, i32
  }
  func.func @transform_2(%arg0: i32) -> (i32, i32) {
    %c0_i32 = arith.constant 0 : i32
    %c0_i32_0 = arith.constant 0 : i32
    %c0_i32_1 = arith.constant 0 : i32
    return %c0_i32, %c0_i32_0 : i32, i32
  }
  func.func @transform_3(%arg0: i32) -> (i32, i32) {
    %c0_i32 = arith.constant 0 : i32
    %c0_i32_0 = arith.constant 0 : i32
    %c0_i32_1 = arith.constant 0 : i32
    return %c0_i32, %c0_i32_0 : i32, i32
  }
  func.func @transform_4(%arg0: i32) -> (i32, i32) {
    %c0_i32 = arith.constant 0 : i32
    %c0_i32_0 = arith.constant 0 : i32
    %c0_i32_1 = arith.constant 0 : i32
    return %c0_i32, %c0_i32_0 : i32, i32
  }
  func.func @transform_5(%arg0: i32) -> (i32, i32) {
    %c0_i32 = arith.constant 0 : i32
    %c0_i32_0 = arith.constant 0 : i32
    %c0_i32_1 = arith.constant 0 : i32
    return %c0_i32, %c0_i32_0 : i32, i32
  }
  func.func @transform_6(%arg0: i32) -> (i32, i32) {
    %c0_i32 = arith.constant 0 : i32
    %c0_i32_0 = arith.constant 0 : i32
    %c0_i32_1 = arith.constant 0 : i32
    return %c0_i32, %c0_i32_0 : i32, i32
  }
  func.func @transform_7(%arg0: i32) -> (i32, i32) {
    %c0_i32 = arith.constant 0 : i32
    %c0_i32_0 = arith.constant 0 : i32
    %c0_i32_1 = arith.constant 0 : i32
    return %c0_i32, %c0_i32_0 : i32, i32
  }
  func.func @transform_8(%arg0: i32) -> (i32, i32) {
    %c0_i32 = arith.constant 0 : i32
    %c0_i32_0 = arith.constant 0 : i32
    %c0_i32_1 = arith.constant 0 : i32
    return %c0_i32, %c0_i32_0 : i32, i32
  }
  func.func @transform_9(%arg0: i32) -> (i32, i32) {
    %c0_i32 = arith.constant 0 : i32
    %c0_i32_0 = arith.constant 0 : i32
    %c0_i32_1 = arith.constant 0 : i32
    return %c0_i32, %c0_i32_0 : i32, i32
  }
  func.func @transform_10(%arg0: i32) -> (i32, i32) {
    %c0_i32 = arith.constant 0 : i32
    %c0_i32_0 = arith.constant 0 : i32
    %c0_i32_1 = arith.constant 0 : i32
    return %c0_i32, %c0_i32_0 : i32, i32
  }
  func.func @transform_11(%arg0: i32) -> (i32, i32, i32) {
    %c0_i32 = arith.constant 0 : i32
    %c0_i32_0 = arith.constant 0 : i32
    %c0_i32_1 = arith.constant 0 : i32
    return %arg0, %c0_i32, %c0_i32_0 : i32, i32, i32
  }
}

</mosaic_0001>

<bundles_post_ra>
// kernel: reconstruction_decoder_forward.1
= control target key start
LH: loop header
LB: loop body
LE: loop exit
PB: predicated region body
PF: predicated region fallthrough
CT: control target
= control target key end

     0   :  { %16 = vsyncpa [#allocation3], 0  ;;  %s2191_s0 = inlined_call_operand.hbm [shape: f32[2,16], index: 0, kind: input, shape index: {}]   ;;  %s2192_s1 = inlined_call_operand.vmem [shape: f32[16,128], index: 1, kind: input, shape index: {}]   ;;  %s2193_s2 = inlined_call_operand.vmem [shape: f32[1,128], index: 2, kind: input, shape index: {}]   ;;  %s2194_s3 = inlined_call_operand.hbm [shape: f32[8,16], index: 3, kind: input, shape index: {}]   ;;  %s2195_s4 = inlined_call_operand.vmem [shape: f32[32,48], index: 4, kind: input, shape index: {}]   ;;  %s2196_s5 = inlined_call_operand.vmem [shape: f32[32,1], index: 5, kind: input, shape index: {}]   ;;  %s2197_s6 = inlined_call_operand.vmem [shape: f32[16,32], index: 6, kind: input, shape index: {}]   ;;  %s2198_s7 = inlined_call_operand.vmem [shape: f32[32,96], index: 7, kind: input, shape index: {}]   ;;  %s2199_s8 = inlined_call_operand.vmem [shape: f32[32,1], index: 8, kind: input, shape index: {}]   ;;  %s2200_s9 = inlined_call_operand.vmem [shape: f32[8,96], index: 9, kind: input, shape index: {}]   ;;  %s2201_s10 = inlined_call_operand.vmem [shape: f32[8,1], index: 10, kind: input, shape index: {}]   ;;  %s2202_s11 = inlined_call_operand.hbm [shape: f32[2,8,32], index: 11, kind: output, shape index: {}]  }
   0x1   :  { %17 = vsyncpa [#allocation6], 0 }
   0x2   :  { %18 = vsyncpa [#allocation4], 0 }
   0x3   :  { %20 = vsyncpa [#allocation4 + $0x1], 0  ;;  %s1877_s17 = smov 0   ;;  %s1879_s18 = smov 0  }
   0x4   :  { %s1881_s19 = smov 0   ;;  %s1883_s20 = smov 0  }
   0x5 LB: > { %2209 = sst [smem:[#allocation11_spill]] %s1787_s19  ;;  %s1898_s21 = sadd.s32 4294967295, %s1791_s20   ;;  %s1791_s20 = sphi %s1883_s20, %s2227_s20   ;;  %s1787_s19 = sphi %s1881_s19, %s2229_s19   ;;  %s1783_s18 = sphi %s1879_s18, %s2231_s18   ;;  %s1779_s17 = sphi %s1877_s17, %s2230_s17  }
   0x6   : > { %s1245_s22 = sadd.s32 4294967294, %s1791_s20   ;;  %s1902_s23 = sadd.s32 1, %s1791_s20  }
   0x7   : > { %2210 = sst [smem:[#allocation12_spill]] %s1902_s23  ;;  %s264_s24 = sadd.s32 1, %s1787_s19 }
   0x8   : > { %s261_s25 = ssub.s32 %s1791_s20, %s1902_s23  ;;  %p274_p0 = scmp.ne.s32.totalorder %s1787_s19, %s1783_s18 }
   0x9   : > { %p262_p1 = scmp.eq.s32.totalorder %s261_s25, 0  ;;  %p275_p2 = scmp.eq.s32.totalorder %s1898_s21, 1 }
   0xa   : > { %p280_p3 = scmp.ne.s32.totalorder %s1783_s18, %s1779_s17  ;;  %p281_p4 = scmp.eq.s32.totalorder %s1245_s22, 1 }
   0xb   : > { %s1913_s26 = scalar_select %p262_p1, %s1787_s19, %s264_s24  }
   0xc   : > { %p1915_p5 = por %p275_p2, %p274_p0  ;;  %p1919_p6 = por %p281_p4, %p280_p3 }
   0xd   : > { %2211 = sst [smem:[#allocation13_spill]] %s1913_s26  ;;  %p1246_p7 = scmp.ge.s32.totalorder %s1791_s20, 1 }
   0xe   : > { %s2212_s27 = scalar_select %p1915_p5, 1, 0 }
   0xf   : > { %s2213_s28 = scalar_select %p1919_p6, 1, 0 }
  0x10   : > { %p288_p8 = scmp.lt.s32.totalorder %s1791_s20, 3  ;;  %p2204_p9 = scmp.eq.s32.totalorder %s1898_s21, 0 }
  0x11   : > { %s1793_s30 = smov [#allocation2]   ;;  %s1794_s13 = smov [#allocation5]  }
  0x12   : > { %p1926_p10 = pnand %p1246_p7, %p288_p8  ;;  %s301_s12 = sshll.u32 %s1793_s30, 4  ;;  %s302_s12 = int_to_ptr.vmem [resolvable:$true] %s301_s12 }
  0x13   : > { %s318_s14 = sshll.u32 %s1794_s13, 4  ;;  %s1665_s24 = scalar_lea.hbm %s2191_s0, 32  ;;  %s1938_s14 = int_to_ptr.vmem [resolvable:$true] %s318_s14 }
  0x14   : > { %s2214_s29 = scalar_select %p1926_p10, 1, 0 }
  0x15   : > { %p1542_p11 = pneg %p1926_p10  ;;  %p1666_p13 = scmp.ne.s32.totalorder %s2191_s0, %s1665_s24 }
  0x16   : > { %p1672_p3 = scmp.lt.u32.totalorder %s1665_s24, %s2191_s0 }
  0x17   : > { %p1934_p12 = pnand %p2204_p9, %p1542_p11 }
  0x19   : > { %p1667_p0 = pneg %p1934_p12 }
  0x1b   : > { %p1668_p1 = pnand %p1667_p0, %p1666_p13 }
  0x1d   : > { %p1669_p2 = pneg %p1668_p1 }
  0x1f   : > { %p1674_p4 = pnand %p1672_p3, %p1669_p2 }
  0x21   : > { %1677 = shalt.err (!%p1674_p4)
}
  0x22   : > { %s1678_s19 = scalar_lea.vmem %s302_s12, 32  ;;  %p1686_p9 = scmp.lt.s32.totalorder %s302_s12, %s302_s12 }
  0x23   : > { %p1679_p7 = scmp.ne.s32.totalorder %s302_s12, %s1678_s19  ;;  %p1687_p6 = scmp.lt.s32.totalorder %s1678_s19, %s1678_s19 }
  0x25   : > { %p1681_p8 = pnand %p1679_p7, %p1667_p0  ;;  %p1688_p5 = por %p1687_p6, %p1686_p9 }
  0x27   : > { %p1682_p11 = pneg %p1681_p8 }
  0x29   : > { %p1689_p10 = pnand %p1688_p5, %p1682_p11 }
  0x2b   : > { %1692 = shalt.err (!%p1689_p10)
}
  0x2c   : > { %1545 = dma.hbm_to_vmem [thread:$0]  (!%p1934_p12), %s2191_s0, 32, %s302_s12, [#allocation3]  }
  0x2d   : > { %s1693_s25 = scalar_lea.hbm %s2194_s3, 128 }
  0x2e   : > { %p1694_p13 = scmp.ne.s32.totalorder %s2194_s3, %s1693_s25  ;;  %p1700_p9 = scmp.lt.u32.totalorder %s1693_s25, %s2194_s3 }
  0x30   : > { %p1696_p6 = pnand %p1694_p13, %p1667_p0 }
  0x32   : > { %p1697_p5 = pneg %p1696_p6 }
  0x34   : > { %p1702_p10 = pnand %p1700_p9, %p1697_p5 }
  0x36   : > { %1705 = shalt.err (!%p1702_p10)
}
  0x37   : > { %s1706_s12 = scalar_lea.vmem %s1938_s14, 128  ;;  %p1714_p4 = scmp.lt.s32.totalorder %s1938_s14, %s1938_s14 }
  0x38   : > { %p1707_p1 = scmp.ne.s32.totalorder %s1938_s14, %s1706_s12  ;;  %p1715_p7 = scmp.lt.s32.totalorder %s1706_s12, %s1706_s12 }
  0x3a   : > { %p1709_p2 = pnand %p1707_p1, %p1667_p0  ;;  %p1716_p8 = por %p1715_p7, %p1714_p4 }
  0x3c   : > { %p1710_p3 = pneg %p1709_p2 }
  0x3e   : > { %p1717_p11 = pnand %p1716_p8, %p1710_p3 }
  0x40   : > { %1720 = shalt.err (!%p1717_p11)
}
  0x41   : > { %1548 = dma.hbm_to_vmem [thread:$0]  (!%p1934_p12), %s2194_s3, 128, %s1938_s14, [#allocation6]  }
  0x42   : > { %p2216_p13 = scmp.ne.s32.totalorder %s2214_s29, 0 }
  0x43   : > { %p2217_p6 = scmp.eq.s32.totalorder (!%p2216_p13), %s1898_s21, 0 }
  0x44   : > { %352 = sbr.rel (%p2216_p13) target bundleno = 1958 (0x7a6), region = 64 }
  0x4b   : > { %1766 = dma.done.wait (%p2217_p6), [#allocation3], 32   ;;  %p2218_p0 = pmov %p2217_p6 }
  0x4d   : > { %1768 = vsyncadd (%p2218_p0), [#allocation3], 4294967264  ;;  %p2219_p5 = pmov %p2218_p0 }
  0x4e   : > { %p2220_p9 = pmov %p2218_p0 }
  0x4f   : > { %1770 = dma.done.wait (%p2219_p5), [#allocation6], 128  }
  0x50   : > { %1772 = vsyncadd (%p2220_p9), [#allocation6], 4294967168  ;;  %v1795_v0 = vmov 0.0|0.0   ;;  %vm1796_vm0 = vmmov 0   ;;  %v1797_v1 = vmov 0.0   ;;  %v393_v2 = vld [vmem:[%s2192_s1] sm:$0xff] }
  0x51   : > { %1455 = vmatprep.subr.bf16.mxu0 %v1795_v0  ;;  %1362 = vmatprep.mubr.msk.f32.mxu0 %vm1796_vm0, %v1797_v1  ;;  %v394_v3 = vld [vmem:[%s2192_s1 + $0x8] sm:$0xff]  ;;  %s1304_s26 = scalar_lea.vmem [#allocation2], %s1791_s20  ;;  %vm396_vm1 = vcmask 130048   ;;  %v395_v6 = vld [vmem:[%s2193_s2] sm:$0x1]  ;;  %s1798_s30 = smov 64  }
  0x52   : > { %v1456_v4 = vpack.c.bf16 %v394_v3, %v393_v2  ;;  %v1306_v5 = vld [vmem:[%s1304_s26 - $0x1] sm:$0x1]  ;;  %s1799_s13 = smov 120   ;;  %s1800_s19 = smov 56   ;;  %v544_v14 = vld [vmem:[#allocation5] sm:$0xff]  ;;  %vm523_vm2 = vcmask 1040384  }
  0x53   : > { %s1801_s12 = smov 112   ;;  %s1802_s23 = smov 48   ;;  %1365 = vmatprep.subr.mxu1 %v544_v14  ;;  %vm525_vm3 = vcmask 1041408   ;;  %vm527_vm4 = vcmask 1042432   ;;  %vm529_vm5 = vcmask 1043456   ;;  %vm531_vm6 = vcmask 1044480  }
  0x54   : > { %1457 = vmatpush3.bf16.msra.mxu0 %v1456_v4  ;;  %s1803_s16 = smov 104   ;;  %s1804_s29 = smov 40   ;;  %1366 = vmatpush3.msra.mxu1 %v544_v14  ;;  %vm533_vm7 = vcmask 1045504   ;;  %vm535_vm8 = vcmask 1046528   ;;  %vm545_vm9 = vcmask 64512   ;;  %v647_v51 = vld [vmem:[%s2195_s4] sm:$0xff] }
  0x55   : > { %s1805_s14 = smov 96   ;;  %s1806_s15 = smov 32   ;;  %vm675_vm10 = vcmask 392192   ;;  %v651_v52 = vld [vmem:[%s2196_s5] sm:$0xff]  ;;  %v1815_v53 = vmov 0   ;;  %v652_v54 = vld [vmem:[%s2196_s5 + $0x8] sm:$0xff] }
  0x56   : > { %s1807_s22 = smov 88   ;;  %s1808_s26 = smov 24   ;;  %1623 = vset.pattern.permute.xlu1 %v1815_v53  ;;  %1624 = vset.pattern.permute.xlu0 %v1815_v53  ;;  %v653_v55 = vld [vmem:[%s2196_s5 + $0x10] sm:$0xff]  ;;  %v654_v56 = vld [vmem:[%s2196_s5 + $0x18] sm:$0xff]  ;;  %vm635_vm11 = vcmask 7168   ;;  %vm644_vm14 = vcmask 121856  }
  0x57   : > { %1363 = vmatmul.mubr.msk.f32.vlgmr.msra.gmra.mrb[0].mxu0 %vm396_vm1, %v1306_v5  ;;  %s1809_s24 = smov 80   ;;  %s1810_s25 = smov 16   ;;  %vm1257_vm12 = vmneg %vm635_vm11  ;;  %v648_v4 = vld [vmem:[%s2195_s4 + $0x8] sm:$0xff]  ;;  %v649_v5 = vld [vmem:[%s2195_s4 + $0x10] sm:$0xff] }
  0x58   : > { %vm2035_vm13 = vmpackc.low %vm1257_vm12, %vm1257_vm12  ;;  %p2225_p10 = scmp.ne.s32.totalorder %s2212_s27, 0 }
  0x59   : > { %vm1469_vm15 = vmpackc.low %vm644_vm14, %vm644_vm14 }
 0x12a   : > { %v466_v7 = vpop.f32.mrb[0].mxu0 }
 0x12b   : > { %v467_v8 = vadd.f32 %v466_v7, %v395_v6  ;;  %v1364_v9 = vpop.f32.mrb[1].mxu0  ;;  %v650_v6 = vld [vmem:[%s2195_s4 + $0x18] sm:$0xff]  ;;  %v777_v7 = vld [vmem:[%s2197_s6] sm:$0xff] }
 0x12d   : > { %499 = vrot.lane.b32.xlu1 %v467_v8, %s1798_s30  ;;  %v471_v10 = vrot.slane %v467_v8, 7  ;;  %v475_v11 = vrot.slane %v467_v8, 6  ;;  %v479_v12 = vrot.slane %v467_v8, 5  ;;  %v483_v13 = vrot.slane %v467_v8, 4  ;;  %s1811_s30 = smov 72  }
 0x12e   : > { %v487_v15 = vrot.slane %v467_v8, 3  ;;  %v491_v16 = vrot.slane %v467_v8, 2  ;;  %v495_v17 = vrot.slane %v467_v8, 1 }
 0x12f   : > { %472 = vrot.lane.b32.xlu0 %v471_v10, %s1799_s13  ;;  %s1812_s13 = smov 8  }
 0x131   : > { %502 = vrot.lane.b32.xlu1 %v471_v10, %s1800_s19  ;;  %s1813_s19 = smov 127  }
 0x133   : > { %476 = vrot.lane.b32.xlu0 %v475_v11, %s1801_s12  ;;  %s1814_s12 = smov 1  }
 0x135   : > { %505 = vrot.lane.b32.xlu1 %v475_v11, %s1802_s23 }
 0x137   : > { %480 = vrot.lane.b32.xlu0 %v479_v12, %s1803_s16 }
 0x139   : > { %508 = vrot.lane.b32.xlu1 %v479_v12, %s1804_s29 }
 0x13b   : > { %484 = vrot.lane.b32.xlu0 %v483_v13, %s1805_s14  ;;  %s1816_s14 = smov [#allocation7]  }
 0x13d   : > { %511 = vrot.lane.b32.xlu1 %v483_v13, %s1806_s15  ;;  %s1725_s15 = sshll.u32 %s1816_s14, 4  ;;  %s1726_s15 = int_to_ptr.vmem [resolvable:$false] %s1725_s15 }
 0x13f   : > { %488 = vrot.lane.b32.xlu0 %v487_v15, %s1807_s22  ;;  %s388_s22 = sand.u32 1, %s1783_s18  }
 0x140   : > { %s1162_s29 = scalar_lea.sflag [#allocation4], %s388_s22 }
 0x141   : > { %514 = vrot.lane.b32.xlu1 %v487_v15, %s1808_s26  ;;  %s1252_s26 = sshll.u32 %s388_s22, 3 }
 0x143   : > { %492 = vrot.lane.b32.xlu0 %v491_v16, %s1809_s24  ;;  %s1301_s24 = sshll.u32 %s1898_s21, 7 }
 0x144   : > { %s2149_s16 = scalar_lea.hbm %s2202_s11, %s1301_s24 }
 0x145   : > { %517 = vrot.lane.b32.xlu1 %v491_v16, %s1810_s25  ;;  %s390_s25 = scalar_lea.vmem [#allocation7], %s1252_s26 }
 0x147   : > { %496 = vrot.lane.b32.xlu0 %v495_v17, %s1811_s30  ;;  %s1175_s30 = sshll.u32 %s390_s25, 4  ;;  %s2151_s30 = int_to_ptr.vmem [resolvable:$true] %s1175_s30 }
 0x148   : > { %s1721_s21 = scalar_lea.vmem %s2151_s30, 128  ;;  %p1728_p3 = scmp.lt.s32.totalorder %s2151_s30, %s1726_s15 }
 0x149   : > { %p1722_p12 = scmp.ne.s32.totalorder %s2151_s30, %s1721_s21 }
 0x14b   : > { %520 = vrot.lane.b32.xlu0 %v495_v17, %s1812_s13  ;;  %p1723_p1 = pnand %p1722_p12, %p2225_p10 }
 0x14d   : > { %p1724_p2 = pneg %p1723_p1 }
 0x19f   : > { %v500_v18 = vpop.permute.xlu1 %499 }
 0x1a1   : > { %v473_v19 = vpop.permute.xlu0 %472 }
 0x1a2   : > { %v524_v28 = vsel %vm523_vm2, %v467_v8, %v473_v19  ;;  %v778_v8 = vld [vmem:[%s2197_s6 + $0x8] sm:$0xff] }
 0x1a3   : > { %v503_v20 = vpop.permute.xlu1 %502  ;;  %v1474_v9 = vpack.c.bf16 %v778_v8, %v777_v7 }
 0x1a4   : > { %v537_v34 = vsel %vm523_vm2, %v500_v18, %v503_v20 }
 0x1a5   : > { %v477_v21 = vpop.permute.xlu0 %476  ;;  %1475 = vmatprep.subr.bf16.mxu0 %v1474_v9 }
 0x1a6   : > { %v526_v30 = vsel %vm525_vm3, %v524_v28, %v477_v21  ;;  %1477 = vmatpush3.bf16.msra.mxu0 %v1474_v9 }
 0x1a7   : > { %v506_v22 = vpop.permute.xlu1 %505 }
 0x1a8   : > { %v538_v36 = vsel %vm525_vm3, %v537_v34, %v506_v22  ;;  %v919_v34 = vld [vmem:[%s2199_s8 + $0x10] sm:$0xff]  ;;  %vm1159_vm3 = vcmask 261120  }
 0x1a9   : > { %v481_v23 = vpop.permute.xlu0 %480 }
 0x1aa   : > { %v528_v32 = vsel %vm527_vm4, %v526_v30, %v481_v23 }
 0x1ab   : > { %v509_v24 = vpop.permute.xlu1 %508 }
 0x1ac   : > { %v539_v39 = vsel %vm527_vm4, %v538_v36, %v509_v24  ;;  %v913_v36 = vld [vmem:[%s2198_s7] sm:$0xff] }
 0x1ad   : > { %v485_v25 = vpop.permute.xlu0 %484 }
 0x1ae   : > { %v530_v33 = vsel %vm529_vm5, %v528_v32, %v485_v25 }
 0x1af   : > { %v512_v26 = vpop.permute.xlu1 %511 }
 0x1b0   : > { %v540_v42 = vsel %vm529_vm5, %v539_v39, %v512_v26 }
 0x1b1   : > { %v489_v27 = vpop.permute.xlu0 %488 }
 0x1b2   : > { %v532_v35 = vsel %vm531_vm6, %v530_v33, %v489_v27  ;;  %v917_v33 = vld [vmem:[%s2199_s8] sm:$0xff] }
 0x1b3   : > { %v515_v29 = vpop.permute.xlu1 %514 }
 0x1b4   : > { %v541_v43 = vsel %vm531_vm6, %v540_v42, %v515_v29 }
 0x1b5   : > { %v493_v31 = vpop.permute.xlu0 %492 }
 0x1b6   : > { %v534_v37 = vsel %vm533_vm7, %v532_v35, %v493_v31  ;;  %v918_v35 = vld [vmem:[%s2199_s8 + $0x8] sm:$0xff] }
 0x1b7   : > { %v518_v40 = vpop.permute.xlu1 %517 }
 0x1b8   : > { %v542_v44 = vsel %vm533_vm7, %v541_v43, %v518_v40 }
 0x1b9   : > { %v497_v38 = vpop.permute.xlu0 %496 }
 0x1ba   : > { %v536_v41 = vsel %vm535_vm8, %v534_v37, %v497_v38  ;;  %v920_v37 = vld [vmem:[%s2199_s8 + $0x18] sm:$0xff] }
 0x1bb   : > { %1367 = vmatprep.mubr.msk.f32.mxu1 %vm545_vm9, %v536_v41 }
 0x1bd   : > { %v521_v45 = vpop.permute.xlu0 %520 }
 0x1be   : > { %v543_v46 = vsel %vm535_vm8, %v542_v44, %v521_v45 }
 0x1bf   : > { %1368 = vmatmul.mubr.msk.f32.vlgmr.msra.gmra.mrb[0].mxu1 %vm545_vm9, %v543_v46 }
 0x1c0   : > { %1382 = vmatprep.mubr.msk.f32.mxu1 %vm675_vm10, %v647_v51 }
 0x292   : > { %v1369_v47 = vpop.f32.mrb[0].mxu1 }
 0x293   : > { %v618_v48 = vpop.f32.mrb[1].mxu1 }
 0x294   : > { %v1618_v49 = vpack.i.bf16 %v1369_v47, %v618_v48  ;;  %v1464_v50 = vpack.c.bf16 %v1369_v47, %v618_v48 }
 0x296   : > { %1619 = vrot.lane.b32.xlu0 %v1618_v49, %s1813_s19  ;;  %1614 = vrot.lane.b32.xlu1 %v1618_v49, %s1814_s12 }
 0x29a   : > { %657 = vperm.xlu1 %1623, %v651_v52   ;;  %662 = vperm.xlu0 %1624, %v652_v54  }
 0x29e   : > { %667 = vperm.xlu1 %1623, %v653_v55   ;;  %v914_v55 = vld [vmem:[%s2198_s7 + $0x8] sm:$0xff] }
 0x2a2   : > { %672 = vperm.xlu1 %1623, %v654_v56   ;;  %v915_v56 = vld [vmem:[%s2198_s7 + $0x10] sm:$0xff] }
 0x308   : > { %v1615_v57 = vpop.permute.xlu1 %1614  ;;  %v1620_v60 = vpop.permute.xlu0 %1619 }
 0x309   : > { %v1617_v58 = vunpack.i.h.bf16 %v1615_v57  ;;  %v1616_v59 = vunpack.i.l.bf16 %v1615_v57  ;;  %v1622_v63 = vunpack.i.h.bf16 %v1620_v60  ;;  %v1621_v2 = vunpack.i.l.bf16 %v1620_v60  ;;  %v916_v57 = vld [vmem:[%s2198_s7 + $0x18] sm:$0xff] }
 0x30b   : > { %v1458_v62 = vpack.c.bf16 %v1617_v58, %v1616_v59  ;;  %v1468_v3 = vpack.c.bf16 %v1622_v63, %v1621_v2 }
 0x30d   : > { %1460 = vmatprep.subr.msk.bf16.mxu1 %vm2035_vm13, %v1458_v62 }
 0x30e   : > { %1463 = vmatpush3.bf16.msk.msra.mxu1 %vm2035_vm13, %v1458_v62 }
 0x30f   : > { %1465 = vmatprep.subr.bf16.mxu1 %v1464_v50 }
 0x312   : > { %1467 = vmatpush3.bf16.msra.mxu1 %v1464_v50 }
 0x313   : > { %1470 = vmatprep.subr.msk.bf16.mxu1 %vm1469_vm15, %v1468_v3 }
 0x316   : > { %1473 = vmatpush3.bf16.msk.msra.mxu1 %vm1469_vm15, %v1468_v3 }
 0x317   : > { %1510 = vmatprep.subr.bf16.mxu1 %v1795_v0 }
 0x319   : > { %1383 = vmatmul.mubr.msk.f32.vlgmr.msra.gmra.mrb[2].mxu1 %vm675_vm10, %v648_v4  ;;  %v658_v10 = vpop.permute.xlu1 %657  ;;  %v663_v12 = vpop.permute.xlu0 %662 }
 0x31a   : > { %1385 = vmatprep.mubr.msk.f32.mxu1 %vm675_vm10, %v649_v5 }
 0x31d   : > { %1386 = vmatmul.mubr.msk.f32.gmra.mrb[4].mxu1 %vm675_vm10, %v650_v6  ;;  %v668_v11 = vpop.permute.xlu1 %667 }
 0x31e   : > { %1452 = vmatprep.mubr.msk.f32.mxu1 %vm1796_vm0, %v1797_v1  ;;  %vm941_vm0 = vcmask 785408  }
 0x321   : > { %v673_v17 = vpop.permute.xlu1 %672 }
 0x3ec   : > { %v1384_v13 = vpop.f32.mrb[2].mxu1 }
 0x3ed   : > { %v760_v14 = vadd.f32 %v1384_v13, %v663_v12  ;;  %v754_v15 = vpop.f32.mrb[3].mxu1 }
 0x3ee   : > { %v755_v16 = vadd.f32 %v754_v15, %v658_v10 }
 0x3ef   : > { %v774_v19 = vmax.f32 %v760_v14, 0.0 }
 0x3f0   : > { %v773_v1 = vmax.f32 %v755_v16, 0.0  ;;  %v1387_v18 = vpop.f32.mrb[4].mxu1 }
 0x3f1   : > { %v770_v20 = vadd.f32 %v1387_v18, %v673_v17  ;;  %v764_v21 = vpop.f32.mrb[5].mxu1  ;;  %v1080_v17 = vld [vmem:[%s2201_s10] sm:$0xff] }
 0x3f2   : > { %v765_v22 = vadd.f32 %v764_v21, %v668_v11  ;;  %1392 = vmatprep.mubr.msk.f32.mxu0 %vm396_vm1, %v773_v1 }
 0x3f3   : > { %1393 = vmatmul.mubr.msk.f32.vlgmr.msra.gmra.mrb[2].mxu0 %vm396_vm1, %v774_v19  ;;  %v776_v24 = vmax.f32 %v770_v20, 0.0 }
 0x3f4   : > { %v775_v23 = vmax.f32 %v765_v22, 0.0 }
 0x3f6   : > { %1395 = vmatprep.mubr.msk.f32.mxu0 %vm396_vm1, %v775_v23 }
 0x3f7   : > { %1396 = vmatmul.mubr.msk.f32.gmra.mrb[4].mxu0 %vm396_vm1, %v776_v24  ;;  %vm908_vm1 = vcmask 252928  }
 0x3f8   : > { %1422 = vmatprep.mubr.msk.f32.mxu0 %vm941_vm0, %v913_v36  ;;  %vm2096_vm2 = vmpackc.low %vm908_vm1, %vm908_vm1 }
 0x4c6   : > { %v1394_v25 = vpop.f32.mrb[2].mxu0 }
 0x4c7   : > { %v857_v26 = vpop.f32.mrb[3].mxu0 }
 0x4c8   : > { %v1635_v27 = vpack.i.bf16 %v1394_v25, %v857_v26  ;;  %v1490_v28 = vpack.c.bf16 %v1394_v25, %v857_v26 }
 0x4ca   : > { %1626 = vrot.lane.b32.xlu0 %v1635_v27, %s1814_s12  ;;  %v1397_v29 = vpop.f32.mrb[4].mxu0 }
 0x4cb   : > { %v867_v30 = vpop.f32.mrb[5].mxu0 }
 0x4cc   : > { %v1640_v31 = vpack.i.bf16 %v1397_v29, %v867_v30  ;;  %v1494_v32 = vpack.c.bf16 %v1397_v29, %v867_v30 }
 0x4ce   : > { %1636 = vrot.lane.b32.xlu0 %v1635_v27, %s1813_s19  ;;  %1631 = vrot.lane.b32.xlu1 %v1640_v31, %s1814_s12 }
 0x4d2   : > { %923 = vperm.xlu0 %1624, %v917_v33   ;;  %1641 = vrot.lane.b32.xlu1 %v1640_v31, %s1813_s19 }
 0x4d6   : > { %933 = vperm.xlu0 %1624, %v919_v34   ;;  %928 = vperm.xlu1 %1623, %v918_v35  }
 0x4da   : > { %938 = vperm.xlu1 %1623, %v920_v37  }
 0x53c   : > { %v1627_v38 = vpop.permute.xlu0 %1626 }
 0x53d   : > { %v1629_v39 = vunpack.i.h.bf16 %v1627_v38  ;;  %v1628_v40 = vunpack.i.l.bf16 %v1627_v38 }
 0x53f   : > { %v1478_v41 = vpack.c.bf16 %v1629_v39, %v1628_v40 }
 0x540   : > { %v1632_v42 = vpop.permute.xlu1 %1631  ;;  %v1637_v46 = vpop.permute.xlu0 %1636 }
 0x541   : > { %v1634_v43 = vunpack.i.h.bf16 %v1632_v42  ;;  %v1633_v44 = vunpack.i.l.bf16 %v1632_v42  ;;  %1480 = vmatprep.subr.msk.bf16.mxu0 %vm2035_vm13, %v1478_v41  ;;  %v1639_v47 = vunpack.i.h.bf16 %v1637_v46  ;;  %v1638_v48 = vunpack.i.l.bf16 %v1637_v46 }
 0x542   : > { %1483 = vmatpush3.bf16.msk.msra.mxu0 %vm2035_vm13, %v1478_v41 }
 0x543   : > { %v1484_v45 = vpack.c.bf16 %v1634_v43, %v1633_v44  ;;  %v1498_v51 = vpack.c.bf16 %v1639_v47, %v1638_v48 }
 0x544   : > { %v1642_v49 = vpop.permute.xlu1 %1641 }
 0x545   : > { %1486 = vmatprep.subr.msk.bf16.mxu0 %vm2035_vm13, %v1484_v45  ;;  %v1644_v52 = vunpack.i.h.bf16 %v1642_v49  ;;  %v1643_v53 = vunpack.i.l.bf16 %v1642_v49 }
 0x546   : > { %1489 = vmatpush3.bf16.msk.msra.mxu0 %vm2035_vm13, %v1484_v45 }
 0x547   : > { %1491 = vmatprep.subr.bf16.mxu0 %v1490_v28  ;;  %v1504_v54 = vpack.c.bf16 %v1644_v52, %v1643_v53 }
 0x54a   : > { %1493 = vmatpush3.bf16.msra.mxu0 %v1490_v28 }
 0x54b   : > { %1495 = vmatprep.subr.bf16.mxu0 %v1494_v32 }
 0x54e   : > { %1497 = vmatpush3.bf16.msra.mxu0 %v1494_v32  ;;  %v1079_v32 = vld [vmem:[%s2200_s9] sm:$0xff] }
 0x54f   : > { %1500 = vmatprep.subr.msk.bf16.mxu0 %vm2096_vm2, %v1498_v51 }
 0x551   : > { %v924_v59 = vpop.permute.xlu0 %923 }
 0x552   : > { %1503 = vmatpush3.bf16.msk.msra.mxu0 %vm2096_vm2, %v1498_v51 }
 0x553   : > { %1506 = vmatprep.subr.msk.bf16.mxu0 %vm2096_vm2, %v1504_v54 }
 0x555   : > { %v929_v58 = vpop.permute.xlu1 %928  ;;  %v934_v7 = vpop.permute.xlu0 %933 }
 0x556   : > { %1509 = vmatpush3.bf16.msk.msra.mxu0 %vm2096_vm2, %v1504_v54 }
 0x559   : > { %1423 = vmatmul.mubr.msk.f32.vlgmr.msra.gmra.mrb[6].mxu0 %vm941_vm0, %v914_v55  ;;  %v939_v4 = vpop.permute.xlu1 %938 }
 0x55a   : > { %1425 = vmatprep.mubr.msk.f32.mxu0 %vm941_vm0, %v915_v56 }
 0x55d   : > { %1426 = vmatmul.mubr.msk.f32.gmra.mrb[8].mxu0 %vm941_vm0, %v916_v57 }
 0x62c   : > { %v1424_v60 = vpop.f32.mrb[6].mxu0 }
 0x62d   : > { %v1026_v62 = vadd.f32 %v1424_v60, %v929_v58  ;;  %v1020_v63 = vpop.f32.mrb[7].mxu0 }
 0x62e   : > { %v1021_v2 = vadd.f32 %v1020_v63, %v924_v59 }
 0x62f   : > { %v1040_v3 = vmax.f32 %v1026_v62, 0.0 }
 0x630   : > { %v1039_v5 = vmax.f32 %v1021_v2, 0.0  ;;  %v1427_v6 = vpop.f32.mrb[8].mxu0 }
 0x631   : > { %v1036_v8 = vadd.f32 %v1427_v6, %v939_v4  ;;  %v1030_v9 = vpop.f32.mrb[9].mxu0 }
 0x632   : > { %v1519_v10 = vpack.c.bf16 %v1040_v3, %v1039_v5  ;;  %v1031_v11 = vadd.f32 %v1030_v9, %v934_v7  ;;  %v1645_v12 = vpack.i.bf16 %v1040_v3, %v1039_v5 }
 0x633   : > { %v1042_v13 = vmax.f32 %v1036_v8, 0.0 }
 0x634   : > { %v1041_v14 = vmax.f32 %v1031_v11, 0.0  ;;  %1646 = vrot.lane.b32.xlu0 %v1645_v12, %s1814_s12 }
 0x636   : > { %v1522_v15 = vpack.c.bf16 %v1042_v13, %v1041_v14  ;;  %v1650_v16 = vpack.i.bf16 %v1042_v13, %v1041_v14 }
 0x638   : > { %1651 = vrot.lane.b32.xlu1 %v1650_v16, %s1814_s12  ;;  %1656 = vrot.lane.b32.xlu0 %v1645_v12, %s1813_s19 }
 0x63c   : > { %1661 = vrot.lane.b32.xlu1 %v1650_v16, %s1813_s19  ;;  %1083 = vperm.xlu0 %1624, %v1080_v17   ;;  %s1727_s19 = scalar_lea.vmem %s1726_s15, 256 }
 0x63d   : > { %p1729_p4 = scmp.lt.s32.totalorder %s1727_s19, %s1721_s21 }
 0x63f   : > { %p1730_p7 = por %p1729_p4, %p1728_p3 }
 0x641   : > { %p1731_p8 = pnand %p1730_p7, %p1724_p2 }
 0x6a6   : > { %v1647_v1 = vpop.permute.xlu0 %1646 }
 0x6a7   : > { %v1649_v18 = vunpack.i.h.bf16 %v1647_v1  ;;  %v1648_v19 = vunpack.i.l.bf16 %v1647_v1 }
 0x6a9   : > { %v1511_v20 = vpack.c.bf16 %v1649_v18, %v1648_v19 }
 0x6aa   : > { %v1652_v21 = vpop.permute.xlu1 %1651  ;;  %v1657_v25 = vpop.permute.xlu0 %1656 }
 0x6ab   : > { %v1654_v22 = vunpack.i.h.bf16 %v1652_v21  ;;  %v1653_v23 = vunpack.i.l.bf16 %v1652_v21  ;;  %1513 = vmatpush3.bf16.msk.msra.mxu1 %vm2035_vm13, %v1511_v20  ;;  %v1659_v26 = vunpack.i.h.bf16 %v1657_v25  ;;  %v1658_v27 = vunpack.i.l.bf16 %v1657_v25 }
 0x6ac   : > { %1514 = vmatprep.subr.bf16.mxu1 %v1795_v0 }
 0x6ad   : > { %v1515_v24 = vpack.c.bf16 %v1654_v22, %v1653_v23  ;;  %v1525_v29 = vpack.c.bf16 %v1659_v26, %v1658_v27 }
 0x6ae   : > { %v1662_v28 = vpop.permute.xlu1 %1661 }
 0x6af   : > { %1517 = vmatpush3.bf16.msk.msra.mxu1 %vm2035_vm13, %v1515_v24  ;;  %v1664_v30 = vunpack.i.h.bf16 %v1662_v28  ;;  %v1663_v31 = vunpack.i.l.bf16 %v1662_v28 }
 0x6b0   : > { %1518 = vmatprep.subr.bf16.mxu1 %v1795_v0 }
 0x6b1   : > { %v1529_v61 = vpack.c.bf16 %v1664_v30, %v1663_v31 }
 0x6b3   : > { %1520 = vmatpush3.bf16.msra.mxu1 %v1519_v10 }
 0x6b4   : > { %1521 = vmatprep.subr.bf16.mxu1 %v1795_v0 }
 0x6b7   : > { %1523 = vmatpush3.bf16.msra.mxu1 %v1522_v15 }
 0x6b8   : > { %1524 = vmatprep.subr.bf16.mxu1 %v1795_v0 }
 0x6bb   : > { %1527 = vmatpush3.bf16.msk.msra.mxu1 %vm2096_vm2, %v1525_v29  ;;  %v1084_v33 = vpop.permute.xlu0 %1083 }
 0x6bc   : > { %1528 = vmatprep.subr.bf16.mxu1 %v1795_v0 }
 0x6bf   : > { %1531 = vmatpush3.bf16.msk.msra.mxu1 %vm2096_vm2, %v1529_v61 }
 0x6c2   : > { %1453 = vmatmul.mubr.msk.f32.vlgmr.msra.gmra.mrb[6].mxu1 %vm941_vm0, %v1079_v32 }
 0x795   : > { %v1155_v34 = vpop.f32.mrb[6].mxu1 }
 0x796   : > { %v1156_v0 = vadd.f32 %v1155_v34, %v1084_v33  ;;  %v1454_v35 = vpop.f32.mrb[7].mxu1 }
 0x798   : > { %1160 = vst.msk [vmem:[%s390_s25] sm:$0xff] %vm1159_vm3, %v1156_v0 }
 0x799   : > { %1734 = shalt.err (!%p1731_p8)
}
 0x79a   : > { %s1735_s12 = scalar_lea.hbm %s2149_s16, 128  ;;  %s1739_s24 = scalar_lea.hbm %s2202_s11, 256 }
 0x79b   : > { %p1736_p11 = scmp.ne.s32.totalorder %s2149_s16, %s1735_s12  ;;  %p1740_p0 = scmp.lt.u32.totalorder %s2149_s16, %s2202_s11 }
 0x79c   : > { %p1741_p5 = scmp.lt.u32.totalorder %s1739_s24, %s1735_s12  ;;  %p1743_p12 = scmp.lt.u32.totalorder %s1735_s12, %s2149_s16 }
 0x79d   : > { %p1737_p13 = pnand %p1736_p11, %p2225_p10 }
 0x79e   : > { %p1742_p9 = por %p1741_p5, %p1740_p0 }
 0x79f   : > { %p1738_p6 = pneg %p1737_p13 }
 0x7a0   : > { %p1744_p1 = por %p1743_p12, %p1742_p9 }
 0x7a2   : > { %p1745_p2 = pnand %p1744_p1, %p1738_p6 }
 0x7a4   : > { %1748 = shalt.err (!%p1745_p2)
}
 0x7a5   : > { %1540 = dma.vmem_to_hbm [thread:$0]  (%p2225_p10), %s2151_s30, 128, %s2149_s16, %s1162_s29  }
 0x7a6 PF: > { %p1557_p3 = scmp.ge.s32.totalorder %s1791_s20, 2  ;;  %s1187_s23 = sand.u32 1, %s1779_s17  }
 0x7a7   : > { %p2226_p4 = scmp.ne.s32.totalorder %s2213_s28, 0  ;;  %s1188_s21 = scalar_lea.sflag [#allocation4], %s1187_s23 }
 0x7a9   : > { %p1550_p7 = pnand %p1557_p3, %p2226_p4 }
 0x7ab   : > { %1774 = dma.done.wait (!%p1550_p7), %s1188_s21, 128  }
 0x7ac   : > { %1776 = vsyncadd (!%p1550_p7), %s1188_s21, 4294967168  ;;  %s2227_s20 = sld [smem:[#allocation12_spill]]  ;;  %s2228_s14 = sld [smem:[#allocation11_spill]] }
 0x7ad   : > { %s2229_s19 = sld [smem:[#allocation13_spill]]  ;;  %s2230_s17 = smov %s1783_s18 }
 0x7b2   : > { %p23_p8 = scmp.ge.s32.totalorder %s2227_s20, 4   ;;  %s2231_s18 = smov %s2228_s14 }
 0x7b4   :  { %25 = sbr.rel (!%p23_p8) target bundleno = 5 (0x5), region = 106 }
 0x7bb   :  { %1193 = vsyncpa [#allocation3], 1 }
 0x7bc   :  { %1195 = vsyncpa [#allocation3 + $0x1], 1 }
 0x7bd   :  { %1196 = vsyncpa [#allocation6], 1 }
 0x7be   :  { %1197 = vsyncpa [#allocation4], 1 }
 0x7bf   :  { %1199 = vsyncpa [#allocation4 + $0x1], 1 }

</bundles_post_ra>
